<compile_context>
chip_gen: v7x
topology: tpu7x:2x2x1
jax: 0.10.0
libtpu: 0.0.40
codegen_flags: <defaults>
</compile_context>

<pallas_src>
import numpy as np
import jax
import jax.numpy as jnp
from jax.experimental import pallas as pl
from jax.experimental.pallas import tpu as pltpu

F32 = jnp.float32
LANE = 128
SUBLANE = 8


def _round_up(x, m):
    return ((x + m - 1) // m) * m


def _pad_to(x, shape):
    pads = [(0, s - d) for d, s in zip(x.shape, shape)]
    return jnp.pad(x, pads)


# ----------------------------------------------------------------------------
# pallas_call helper: whole arrays resident in VMEM, single kernel invocation.
# ----------------------------------------------------------------------------
def _vmem_call(kernel, args, out_shapes):
    single = not isinstance(out_shapes, (tuple, list))
    outs = (out_shapes,) if single else tuple(out_shapes)
    res = pl.pallas_call(
        kernel,
        out_shape=outs,
        in_specs=[pl.BlockSpec(memory_space=pltpu.MemorySpace.VMEM) for _ in args],
        out_specs=tuple(pl.BlockSpec(memory_space=pltpu.MemorySpace.VMEM) for _ in outs),
    )(*args)
    return res[0] if single else res


# ----------------------------------------------------------------------------
# Kernel 1: exact AttnRNNCell forward (single step), fully fused.
#   c: (Bp, Ip)  h_prev: (Bp, Hp)  g: (Bp, 1)
#   w: (Ip+Hp, Hp) = [W^T ; U^T] (zero padded)   b: (1, Hp) = bW + bU
# ----------------------------------------------------------------------------
def attn_rnn_cell_kernel(c_ref, h_ref, g_ref, w_ref, b_ref, o_ref):
    c = c_ref[...]
    h = h_ref[...]
    g = g_ref[...]
    ch = jnp.concatenate([c, h], axis=-1)                 # (Bp, Ip+Hp)
    h_tilda = jnp.tanh(
        jnp.dot(ch, w_ref[...], preferred_element_type=F32) + b_ref[...])
    o_ref[...] = g * h_tilda + (1.0 - g) * h


# ----------------------------------------------------------------------------
# Kernel 2: recurrent application of the cell over a time-major gated memory.
#   c_seq: (T, Bp, Ip)  g_seq: (T, Bp, 1)  h0: (Bp, Hp)
#   wc: (Ip, Hp)  wh: (Hp, Hp)  b: (1, Hp) = bW + bU (folded)
#   out: (T, Bp, Hp) hidden state after each step.
# Input projection W(c_t)+b is hoisted out of the loop into ONE matmul.
# ----------------------------------------------------------------------------
def attn_rnn_scan_kernel(c_ref, g_ref, h0_ref, wc_ref, wh_ref, b_ref, o_ref):
    T, Bp, Ip = c_ref.shape
    Hp = wh_ref.shape[1]
    cw = jnp.dot(c_ref[...].reshape(T * Bp, Ip), wc_ref[...],
                 preferred_element_type=F32).reshape(T, Bp, Hp) + b_ref[...]
    h = h0_ref[...]
    for t in range(T):      # T is small: static unroll, vreg pressure is fine
        h_tilda = jnp.tanh(
            cw[t] + jnp.dot(h, wh_ref[...], preferred_element_type=F32))
        g = g_ref[t]                                       # (Bp, 1)
        h = g * h_tilda + (1.0 - g) * h
        o_ref[t] = h


# ----------------------------------------------------------------------------
# Wrappers (lane/sublane padding + fused-weight packing done at trace time).
# Weights use torch nn.Linear layout: W (H, I), U (H, H), biases (H,).
# ----------------------------------------------------------------------------
def attn_rnn_cell_forward(c, h_prev, g, params):
    B, I = c.shape
    H = h_prev.shape[1]
    Bp, Ip, Hp = _round_up(B, SUBLANE), _round_up(I, LANE), _round_up(H, LANE)

    w_fused = jnp.zeros((Ip + Hp, Hp), F32)
    w_fused = w_fused.at[:I, :H].set(params['W'].T)
    w_fused = w_fused.at[Ip:Ip + H, :H].set(params['U'].T)
    b_fused = jnp.zeros((1, Hp), F32).at[:, :H].set(params['bW'] + params['bU'])

    c_p = _pad_to(c.astype(F32), (Bp, Ip))
    h_p = _pad_to(h_prev.astype(F32), (Bp, Hp))
    g_p = _pad_to(g.astype(F32).reshape(B, 1), (Bp, 1))

    out = _vmem_call(attn_rnn_cell_kernel,
                     (c_p, h_p, g_p, w_fused, b_fused),
                     jax.ShapeDtypeStruct((Bp, Hp), F32))
    return out[:B, :H]


def attn_rnn_sequence_forward(c_seq, g_seq, h0, params):
    T, B, I = c_seq.shape
    H = h0.shape[1]
    Bp, Ip, Hp = _round_up(B, SUBLANE), _round_up(I, LANE), _round_up(H, LANE)

    wc = jnp.zeros((Ip, Hp), F32).at[:I, :H].set(params['W'].T)
    wh = jnp.zeros((Hp, Hp), F32).at[:H, :H].set(params['U'].T)
    b = jnp.zeros((1, Hp), F32).at[:, :H].set(params['bW'] + params['bU'])

    c_p = _pad_to(c_seq.astype(F32), (T, Bp, Ip))
    g_p = _pad_to(g_seq.astype(F32), (T, Bp, 1))
    h0_p = _pad_to(h0.astype(F32), (Bp, Hp))

    out = _vmem_call(attn_rnn_scan_kernel,
                     (c_p, g_p, h0_p, wc, wh, b),
                     jax.ShapeDtypeStruct((T, Bp, Hp), F32))
    return out[:, :B, :H]


# ----------------------------------------------------------------------------
# Pure-JAX references (for correctness checking).
# ----------------------------------------------------------------------------
def attn_rnn_cell_ref(c, h_prev, g, params):
    h_tilda = jnp.tanh(c @ params['W'].T + params['bW']
                       + h_prev @ params['U'].T + params['bU'])
    return g * h_tilda + (1.0 - g) * h_prev


def attn_rnn_sequence_ref(c_seq, g_seq, h0, params):
    hs, h = [], h0
    for t in range(c_seq.shape[0]):
        h = attn_rnn_cell_ref(c_seq[t], h, g_seq[t], params)
        hs.append(h)
    return jnp.stack(hs, axis=0)


if __name__ == "__main__":
    # Module-consistent small shapes: input_size = hidden_size = d_model = 100
    # (d_model is fixed to 100 in the containing module), batch = 8, and a
    # short gated-memory recurrence of length T = 4 (the attention window).
    I, H, B, T = 100, 100, 8, 4

    key = jax.random.PRNGKey(0)
    kW, kU, kbW, kbU, kc, kh, kg, kcs, kgs = jax.random.split(key, 9)
    params = dict(
        W=jax.random.normal(kW, (H, I), F32) * (1.0 / np.sqrt(I)),
        U=jax.random.normal(kU, (H, H), F32) * (1.0 / np.sqrt(H)),
        bW=jax.random.normal(kbW, (H,), F32) * 0.01,
        bU=jax.random.normal(kbU, (H,), F32) * 0.01,
    )

    # --- single-step forward: exactly the PyTorch AttnRNNCell.forward ---
    c = jax.random.normal(kc, (B, I), F32)
    h_prev = jax.random.normal(kh, (B, H), F32)
    g = jax.nn.sigmoid(jax.random.normal(kg, (B, 1), F32))   # attention gate

    h_new = jax.block_until_ready(attn_rnn_cell_forward(c, h_prev, g, params))
    h_ref = attn_rnn_cell_ref(c, h_prev, g, params)
    assert h_new.shape == (B, H)
    assert bool(jnp.all(jnp.isfinite(h_new)))
    assert bool(jnp.allclose(h_new, h_ref, atol=1e-2, rtol=1e-2))

    # --- recurrent application over a gated memory (fused, hoisted W(c_t)) ---
    c_seq = jax.random.normal(kcs, (T, B, I), F32)
    g_seq = jax.nn.sigmoid(jax.random.normal(kgs, (T, B, 1), F32))
    h_seq = jax.block_until_ready(
        attn_rnn_sequence_forward(c_seq, g_seq, h_prev, params))
    h_seq_ref = attn_rnn_sequence_ref(c_seq, g_seq, h_prev, params)
    assert h_seq.shape == (T, B, H)
    assert bool(jnp.all(jnp.isfinite(h_seq)))
    assert bool(jnp.allclose(h_seq, h_seq_ref, atol=1e-2, rtol=1e-2))

    print("KERNEL_OK")
</pallas_src>

<mosaic_0001>
module attributes {stable_mosaic.version = 11 : i64} {
  func.func @attn_rnn_cell_kernel(%arg0: memref<8x128xf32, #tpu.memory_space<vmem>>, %arg1: memref<8x128xf32, #tpu.memory_space<vmem>>, %arg2: memref<8x1xf32, #tpu.memory_space<vmem>>, %arg3: memref<256x128xf32, #tpu.memory_space<vmem>>, %arg4: memref<1x128xf32, #tpu.memory_space<vmem>>, %arg5: memref<8x128xf32, #tpu.memory_space<vmem>>) attributes {dimension_semantics = [], scalar_prefetch = 0 : i64, scratch_operands = 0 : i64, tpu.core_type = #tpu.core_type<tc>} {
    %c0 = arith.constant 0 : index
    %c0_0 = arith.constant 0 : index
    %0 = vector.load %arg0[%c0, %c0_0] : memref<8x128xf32, #tpu.memory_space<vmem>>, vector<8x128xf32>
    %c0_1 = arith.constant 0 : index
    %c0_2 = arith.constant 0 : index
    %1 = vector.load %arg1[%c0_1, %c0_2] : memref<8x128xf32, #tpu.memory_space<vmem>>, vector<8x128xf32>
    %c0_3 = arith.constant 0 : index
    %c0_4 = arith.constant 0 : index
    %2 = vector.load %arg2[%c0_3, %c0_4] : memref<8x1xf32, #tpu.memory_space<vmem>>, vector<8x1xf32>
    %3 = tpu.concatenate %0, %1 in 1 : vector<8x128xf32>, vector<8x128xf32> -> vector<8x256xf32>
    %c0_5 = arith.constant 0 : index
    %c0_6 = arith.constant 0 : index
    %4 = vector.load %arg3[%c0_5, %c0_6] : memref<256x128xf32, #tpu.memory_space<vmem>>, vector<256x128xf32>
    %cst = arith.constant dense<0.000000e+00> : vector<8x128xf32>
    %5 = tpu.matmul %3, %4, %cst {dimension_numbers = #tpu.dot_dimension_numbers<[1], [0], [0], [1], [0, 0, 1, 1], [], []>} : vector<8x256xf32>, vector<256x128xf32>, vector<8x128xf32> -> vector<8x128xf32>
    %c0_7 = arith.constant 0 : index
    %c0_8 = arith.constant 0 : index
    %6 = vector.load %arg4[%c0_7, %c0_8] : memref<1x128xf32, #tpu.memory_space<vmem>>, vector<1x128xf32>
    %7 = vector.broadcast %6 : vector<1x128xf32> to vector<8x128xf32>
    %8 = arith.addf %5, %7 : vector<8x128xf32>
    %9 = math.tanh %8 : vector<8x128xf32>
    %10 = vector.broadcast %2 : vector<8x1xf32> to vector<8x128xf32>
    %11 = arith.mulf %10, %9 : vector<8x128xf32>
    %cst_9 = arith.constant 1.000000e+00 : f32
    %12 = vector.broadcast %cst_9 : f32 to vector<8x1xf32>
    %13 = arith.subf %12, %2 : vector<8x1xf32>
    %14 = vector.broadcast %13 : vector<8x1xf32> to vector<8x128xf32>
    %15 = arith.mulf %14, %1 : vector<8x128xf32>
    %16 = arith.addf %11, %15 : vector<8x128xf32>
    %c0_10 = arith.constant 0 : index
    %c0_11 = arith.constant 0 : index
    %17 = vector.load %arg5[%c0_10, %c0_11] : memref<8x128xf32, #tpu.memory_space<vmem>>, vector<8x128xf32>
    tpu.vector_store %arg5[%c0_10, %c0_11], %16 {strides = array<i32>} : memref<8x128xf32, #tpu.memory_space<vmem>>, vector<8x128xf32>,
    return
  }
}

</mosaic_0001>

<bundles_post_ra>
// kernel: tpu_custom_call.1
= control target key start
LH: loop header
LB: loop body
LE: loop exit
PB: predicated region body
PF: predicated region fallthrough
CT: control target
= control target key end

     0   :  { %10 = vsyncpa [#allocation3], 0  ;;  %s428_s0 = inlined_call_operand.vmem [shape: f32[8,128], index: 0, kind: input, shape index: {}]   ;;  %s429_s1 = inlined_call_operand.hbm [shape: f32[8,128], index: 1, kind: input, shape index: {}]   ;;  %s430_s2 = inlined_call_operand.vmem [shape: f32[8,1], index: 2, kind: input, shape index: {}]   ;;  %s431_s3 = inlined_call_operand.hbm [shape: f32[256,128], index: 3, kind: input, shape index: {}]   ;;  %s432_s4 = inlined_call_operand.vmem [shape: f32[1,128], index: 4, kind: input, shape index: {}]   ;;  %s433_s5 = inlined_call_operand.hbm [shape: f32[8,128], index: 5, kind: output, shape index: {}]  }
   0x1   :  { %11 = vsyncpa [#allocation6], 0 }
   0x2   :  { %12 = vsyncpa [#allocation4], 0  ;;  %s340_s18 = smov [#allocation2]   ;;  %s341_s20 = smov [#allocation5]  }
   0x3   :  { %s21_s19 = sshll.u32 %s340_s18, 4  ;;  %s32_s21 = sshll.u32 %s341_s20, 4  ;;  %s22_s19 = int_to_ptr.vmem [resolvable:$true] %s21_s19  ;;  %s376_s21 = int_to_ptr.vmem [resolvable:$true] %s32_s21 }
   0x4   :  { %s268_s24 = scalar_lea.hbm %s429_s1, 128 }
   0x5   :  { %p269_p0 = scmp.ne.s32.totalorder %s429_s1, %s268_s24  ;;  %p272_p1 = scmp.lt.u32.totalorder %s268_s24, %s429_s1 }
   0x7   :  { %p274_p2 = pnand %p272_p1, %p269_p0 }
   0x9   :  { %277 = shalt.err (!%p274_p2)
}
   0xa   :  { %s278_s29 = scalar_lea.vmem %s22_s19, 128  ;;  %p283_p4 = scmp.lt.s32.totalorder %s22_s19, %s22_s19 }
   0xb   :  { %p279_p3 = scmp.ne.s32.totalorder %s22_s19, %s278_s29  ;;  %p284_p5 = scmp.lt.s32.totalorder %s278_s29, %s278_s29 }
   0xd   :  { %p285_p6 = por %p284_p5, %p283_p4 }
   0xf   :  { %p286_p7 = pnand %p285_p6, %p279_p3 }
  0x11   :  { %289 = shalt.err (!%p286_p7)
}
  0x12   :  { %24 = dma.hbm_to_vmem [thread:$0]  %s429_s1, 128, %s22_s19, [#allocation3]  }
  0x13   :  { %s290_s9 = scalar_lea.hbm %s431_s3, 4096 }
  0x14   :  { %p291_p8 = scmp.ne.s32.totalorder %s431_s3, %s290_s9  ;;  %p294_p9 = scmp.lt.u32.totalorder %s290_s9, %s431_s3 }
  0x16   :  { %p296_p10 = pnand %p294_p9, %p291_p8 }
  0x18   :  { %299 = shalt.err (!%p296_p10)
}
  0x19   :  { %s300_s14 = scalar_lea.vmem %s376_s21, 4096  ;;  %p305_p12 = scmp.lt.s32.totalorder %s376_s21, %s376_s21 }
  0x1a   :  { %p301_p11 = scmp.ne.s32.totalorder %s376_s21, %s300_s14  ;;  %p306_p13 = scmp.lt.s32.totalorder %s300_s14, %s300_s14 }
  0x1c   :  { %p307_p0 = por %p306_p13, %p305_p12 }
  0x1e   :  { %p308_p1 = pnand %p307_p0, %p301_p11 }
  0x20   :  { %311 = shalt.err (!%p308_p1)
}
  0x21   :  { %s342_s1 = smov 128   ;;  %s343_s15 = smov 8  }
  0x22   :  { %38 = dma.hbm_to_vmem [thread:$0]  %s431_s3, 4096, %s376_s21, [#allocation6], %s342_s1, %s342_s1, %s343_s15  }
  0x23   :  { %334 = dma.done.wait [#allocation3], 128  }
  0x24   :  { %335 = vsyncadd [#allocation3], 4294967168 }
  0x25   :  { %336 = dma.done.wait [#allocation6], 4096  }
  0x26   :  { %337 = vsyncadd [#allocation6], 4294963200  ;;  %v344_v0 = vmov 0   ;;  %v66_v1 = vld [vmem:[#allocation5 + $0x80] sm:$0xff]  ;;  %v67_v2 = vld [vmem:[#allocation5 + $0x88] sm:$0xff]  ;;  %s345_s22 = smov [#allocation7]  }
  0x27   :  { %265 = vset.pattern.permute.xlu0 %v344_v0  ;;  %v50_v3 = vld [vmem:[#allocation5] sm:$0xff]  ;;  %v227_v4 = vpack.c.bf16 %v67_v2, %v66_v1  ;;  %v51_v5 = vld [vmem:[#allocation5 + $0x8] sm:$0xff]  ;;  %v68_v6 = vld [vmem:[#allocation5 + $0x90] sm:$0xff]  ;;  %s181_s23 = sshll.u32 %s345_s22, 4  ;;  %s182_s23 = int_to_ptr.vmem [resolvable:$true] %s181_s23 }
  0x28   :  { %v69_v7 = vld [vmem:[#allocation5 + $0x98] sm:$0xff]  ;;  %v229_v8 = vpack.c.bf16 %v51_v5, %v50_v3  ;;  %v52_v10 = vld [vmem:[#allocation5 + $0x10] sm:$0xff]  ;;  %v70_v12 = vld [vmem:[#allocation5 + $0xa0] sm:$0xff]  ;;  %p317_p3 = scmp.lt.s32.totalorder %s182_s23, %s182_s23 }
  0x29   :  { %v231_v9 = vpack.c.bf16 %v69_v7, %v68_v6  ;;  %v53_v11 = vld [vmem:[#allocation5 + $0x18] sm:$0xff]  ;;  %228 = vmatprep.subr.bf16.mxu0 %v227_v4  ;;  %v71_v13 = vld [vmem:[#allocation5 + $0xa8] sm:$0xff]  ;;  %v54_v16 = vld [vmem:[#allocation5 + $0x20] sm:$0xff] }
  0x2a   :  { %230 = vmatpush3.bf16.msra.mxu0 %v229_v8  ;;  %v233_v14 = vpack.c.bf16 %v53_v11, %v52_v10  ;;  %v235_v15 = vpack.c.bf16 %v71_v13, %v70_v12  ;;  %v55_v17 = vld [vmem:[#allocation5 + $0x28] sm:$0xff]  ;;  %v72_v18 = vld [vmem:[#allocation5 + $0xb0] sm:$0xff]  ;;  %v73_v19 = vld [vmem:[#allocation5 + $0xb8] sm:$0xff] }
  0x2b   :  { %232 = vmatprep.subr.bf16.mxu0 %v231_v9  ;;  %v237_v20 = vpack.c.bf16 %v55_v17, %v54_v16  ;;  %v239_v21 = vpack.c.bf16 %v73_v19, %v72_v18  ;;  %v56_v22 = vld [vmem:[#allocation5 + $0x30] sm:$0xff]  ;;  %v57_v23 = vld [vmem:[#allocation5 + $0x38] sm:$0xff]  ;;  %v74_v24 = vld [vmem:[#allocation5 + $0xc0] sm:$0xff] }
  0x2c   :  { %v75_v25 = vld [vmem:[#allocation5 + $0xc8] sm:$0xff]  ;;  %v48_v26 = vld [vmem:[#allocation2] sm:$0xff]  ;;  %v241_v28 = vpack.c.bf16 %v57_v23, %v56_v22  ;;  %v58_v31 = vld [vmem:[#allocation5 + $0x40] sm:$0xff] }
  0x2d   :  { %153 = vmatprep.mubr.f32.mxu0 %v48_v26  ;;  %v49_v27 = vld [vmem:[%s430_s2] sm:$0xff]  ;;  %v243_v30 = vpack.c.bf16 %v75_v25, %v74_v24  ;;  %v59_v32 = vld [vmem:[#allocation5 + $0x48] sm:$0xff]  ;;  %v76_v33 = vld [vmem:[#allocation5 + $0xd0] sm:$0xff] }
  0x2e   :  { %234 = vmatpush3.bf16.msra.mxu0 %v233_v14  ;;  %162 = vperm.xlu0 %265, %v49_v27   ;;  %v166_v29 = vsub.f32 1.0, %v49_v27  ;;  %v77_v34 = vld [vmem:[#allocation5 + $0xd8] sm:$0xff]  ;;  %v245_v35 = vpack.c.bf16 %v59_v32, %v58_v31  ;;  %v60_v37 = vld [vmem:[#allocation5 + $0x50] sm:$0xff]  ;;  %v78_v39 = vld [vmem:[#allocation5 + $0xe0] sm:$0xff] }
  0x2f   :  { %236 = vmatprep.subr.bf16.mxu0 %v235_v15  ;;  %v247_v36 = vpack.c.bf16 %v77_v34, %v76_v33  ;;  %v61_v38 = vld [vmem:[#allocation5 + $0x58] sm:$0xff]  ;;  %v79_v40 = vld [vmem:[#allocation5 + $0xe8] sm:$0xff]  ;;  %v62_v43 = vld [vmem:[#allocation5 + $0x60] sm:$0xff] }
  0x30   :  { %v249_v41 = vpack.c.bf16 %v61_v38, %v60_v37  ;;  %v251_v42 = vpack.c.bf16 %v79_v40, %v78_v39  ;;  %v63_v44 = vld [vmem:[#allocation5 + $0x68] sm:$0xff]  ;;  %v80_v45 = vld [vmem:[#allocation5 + $0xf0] sm:$0xff]  ;;  %v81_v46 = vld [vmem:[#allocation5 + $0xf8] sm:$0xff] }
  0x31   :  { %v253_v47 = vpack.c.bf16 %v63_v44, %v62_v43  ;;  %v255_v48 = vpack.c.bf16 %v81_v46, %v80_v45  ;;  %v64_v49 = vld [vmem:[#allocation5 + $0x70] sm:$0xff]  ;;  %v65_v50 = vld [vmem:[#allocation5 + $0x78] sm:$0xff] }
  0x32   :  { %238 = vmatpush3.bf16.msra.mxu0 %v237_v20  ;;  %169 = vperm.xlu0 %265, %v166_v29   ;;  %v257_v51 = vpack.c.bf16 %v65_v50, %v64_v49  ;;  %v47_v52 = vld [vmem:[%s428_s0] sm:$0xff]  ;;  %s312_s0 = scalar_lea.vmem %s182_s23, 128 }
  0x33   :  { %240 = vmatprep.subr.bf16.mxu0 %v239_v21  ;;  %v191_v54 = vld [vmem:[%s432_s4] ss:$0 sm:$0xff]  ;;  %p313_p2 = scmp.ne.s32.totalorder %s182_s23, %s312_s0  ;;  %p318_p4 = scmp.lt.s32.totalorder %s312_s0, %s312_s0 }
  0x35   :  { %p319_p5 = por %p318_p4, %p317_p3 }
  0x36   :  { %242 = vmatpush3.bf16.msra.mxu0 %v241_v28 }
  0x37   :  { %244 = vmatprep.subr.bf16.mxu0 %v243_v30  ;;  %p320_p6 = pnand %p319_p5, %p313_p2 }
  0x3a   :  { %246 = vmatpush3.bf16.msra.mxu0 %v245_v35 }
  0x3b   :  { %248 = vmatprep.subr.bf16.mxu0 %v247_v36 }
  0x3e   :  { %250 = vmatpush3.bf16.msra.mxu0 %v249_v41 }
  0x3f   :  { %252 = vmatprep.subr.bf16.mxu0 %v251_v42 }
  0x42   :  { %254 = vmatpush3.bf16.msra.mxu0 %v253_v47 }
  0x43   :  { %256 = vmatprep.subr.bf16.mxu0 %v255_v48 }
  0x46   :  { %258 = vmatpush3.bf16.msra.mxu0 %v257_v51 }
  0x49   :  { %154 = vmatmul.mubr.f32.vlgmr.msra.gmra.mrb[0].mxu0 %v47_v52 }
  0xad   :  { %v163_v58 = vpop.permute.xlu0 %162 }
  0xb1   :  { %v170_v59 = vpop.permute.xlu0 %169 }
  0xb2   :  { %v172_v62 = vmul.f32 %v170_v59, %v48_v26 }
 0x11c   :  { %v224_v53 = vpop.f32.mrb[0].mxu0 }
 0x11d   :  { %v225_v55 = vpop.f32.mrb[1].mxu0 }
 0x11e   :  { %v226_v56 = vadd.f32 %v225_v55, %v224_v53 }
 0x120   :  { %v156_v57 = vadd.f32 %v226_v56, %v191_v54 }
 0x122   :  { %266 = vtanh.f32 %v156_v57 }
 0x12c   :  { %v267_v60 = vpop.eup %266 }
 0x12d   :  { %v165_v61 = vmul.f32 %v267_v60, %v163_v58 }
 0x12f   :  { %v173_v63 = vadd.f32 %v172_v62, %v165_v61 }
 0x131   :  { %174 = vst [vmem:[#allocation7] sm:$0xff] %v173_v63 }
 0x132   :  { %323 = shalt.err (!%p320_p6)
}
 0x133   :  { %s324_s25 = scalar_lea.hbm %s433_s5, 128 }
 0x134   :  { %p325_p7 = scmp.ne.s32.totalorder %s433_s5, %s324_s25  ;;  %p328_p8 = scmp.lt.u32.totalorder %s324_s25, %s433_s5 }
 0x136   :  { %p330_p9 = pnand %p328_p8, %p325_p7 }
 0x138   :  { %333 = shalt.err (!%p330_p9)
}
 0x139   :  { %184 = dma.vmem_to_hbm [thread:$0]  %s182_s23, 128, %s433_s5, [#allocation4]  }
 0x13a   :  { %338 = dma.done.wait [#allocation4], 128  }
 0x13b   :  { %339 = vsyncadd [#allocation4], 4294967168 }
 0x13c   :  { %188 = vsyncpa [#allocation3], 1 }
 0x13d   :  { %189 = vsyncpa [#allocation6], 1 }
 0x13e   :  { %190 = vsyncpa [#allocation4], 1 }

</bundles_post_ra>
